<compile_context>
chip_gen: v7x
topology: tpu7x:2x2x1
jax: 0.10.0
libtpu: 0.0.40
codegen_flags: <defaults>
</compile_context>

<pallas_src>
import functools
import math

import jax
import jax.numpy as jnp
from jax.experimental import pallas as pl
from jax.experimental.pallas import tpu as pltpu


# ----------------------------------------------------------------------------- kernel

def _dense_kernel(channels_ref,        # scalar-prefetch (SMEM) — used only in index_maps
                  x_ref,               # (1, B, in_f)            compute dtype
                  w_ref,               # (1, in_f, tile_out)     pre-transposed, gathered
                  *rest,               # [b_ref (1,1,tile_out) f32], o_ref (1, B, tile_out)
                  activation: bool, residual: bool, has_bias: bool):
    del channels_ref
    if has_bias:
        b_ref, o_ref = rest
    else:
        b_ref = None
        (o_ref,) = rest

    x = x_ref[0]                                                   # (B, in_f)
    w = w_ref[0]                                                   # (in_f, tile_out)
    y = jnp.dot(x, w, preferred_element_type=jnp.float32)          # MXU, f32 accumulate
    if has_bias:
        y = y + b_ref[0]                                           # (1, tile_out) broadcast
    if activation:
        y = jnp.tanh(y)                                            # EUP

    if residual:
        # residual disables out_f tiling in the wrapper, so tile_out == out_f here
        in_f = x.shape[-1]
        out_f = y.shape[-1]
        xf = x.astype(jnp.float32)
        if out_f == in_f:
            o_ref[0] = (y + xf).astype(o_ref.dtype)
        elif out_f == 2 * in_f:
            # add x to each lane-half; avoids materializing concat([x, x])
            o_ref[0, :, :in_f] = (y[:, :in_f] + xf).astype(o_ref.dtype)
            o_ref[0, :, in_f:] = (y[:, in_f:] + xf).astype(o_ref.dtype)
        else:
            raise NotImplementedError("Not implemented")
    else:
        o_ref[0] = y.astype(o_ref.dtype)


# ----------------------------------------------------------------------------- tiling

_VMEM_BUDGET = 24 << 20   # fits comfortably under v7x's 64 MiB physical / 32 MiB scoped


def _block_bytes(B, in_f, tile_out, itemsize):
    # double-buffered x, w (compute dtype) + bias, out (<= f32) per grid step
    return 2 * itemsize * (B * in_f + in_f * tile_out) + 2 * 4 * (tile_out + B * tile_out)


def _pick_tile_out(out_f, in_f, B, itemsize, residual):
    if residual:
        return out_f          # residual add needs the full output row per step
    if _block_bytes(B, in_f, out_f, itemsize) <= _VMEM_BUDGET:
        return out_f
    for t in (2048, 1024, 512, 256, 128):
        if out_f % t == 0 and _block_bytes(B, in_f, t, itemsize) <= _VMEM_BUDGET:
            return t
    return 128 if out_f % 128 == 0 else out_f


# ----------------------------------------------------------------------------- wrapper

def dense_forward(x, channels, weight, bias=None, *,
                  activation=False, residual=False,
                  compute_dtype=None, sort_channels=True):
    """x: (B, C, in_f), channels: (C,) int, weight: (NC, out_f, in_f), bias: (NC, out_f)."""
    B, C, in_f = x.shape
    NC, out_f, in_f_w = weight.shape
    assert in_f_w == in_f
    has_bias = bias is not None
    out_dtype = jnp.dtype(x.dtype)
    cdt = jnp.dtype(compute_dtype) if compute_dtype is not None else out_dtype

    if residual and out_f not in (in_f, 2 * in_f):
        raise NotImplementedError("Not implemented")

    channels = channels.astype(jnp.int32)

    # --- layout plumbing (one XLA pass each) --------------------------------------
    # TODO(synk): in a full model keep activations channel-major (C, B, F) and store
    # the weight pre-transposed / pre-cast so these per-call HBM passes disappear.
    if sort_channels:
        perm = jnp.argsort(channels, stable=True)     # duplicates become adjacent
        inv_perm = jnp.argsort(perm)
        ch_sorted = channels[perm]
    else:
        perm = inv_perm = None
        ch_sorted = channels

    x_cm = jnp.transpose(x, (1, 0, 2))                # (C, B, in_f) channel-major
    if perm is not None:
        x_cm = jnp.take(x_cm, perm, axis=0)
    x_cm = x_cm.astype(cdt)

    w_t = jnp.transpose(weight, (0, 2, 1)).astype(cdt)  # (NC, in_f, out_f): x @ w, no vxpose

    tile_out = _pick_tile_out(out_f, in_f, B, cdt.itemsize, residual)
    n_out_tiles = out_f // tile_out                     # tile_out chosen as a divisor

    args = [ch_sorted, x_cm, w_t]
    in_specs = [
        pl.BlockSpec((1, B, in_f), lambda j, c, ch: (c, 0, 0)),             # x (C-major)
        pl.BlockSpec((1, in_f, tile_out), lambda j, c, ch: (ch[c], 0, j)),  # weight gather
    ]
    if has_bias:
        bias_3d = bias.astype(jnp.float32).reshape(NC, 1, out_f)
        in_specs.append(pl.BlockSpec((1, 1, tile_out), lambda j, c, ch: (ch[c], 0, j)))
        args.append(bias_3d)

    out_specs = pl.BlockSpec((1, B, tile_out), lambda j, c, ch: (c, 0, j))

    kernel = functools.partial(_dense_kernel, activation=activation,
                               residual=residual, has_bias=has_bias)

    grid_spec = pltpu.PrefetchScalarGridSpec(
        num_scalar_prefetch=1,
        # channel axis innermost: sorted duplicate channel IDs hit the consecutive
        # block-index weight-DMA dedup; out_f tiles on the outer axis.
        grid=(n_out_tiles, C),
        in_specs=in_specs,
        out_specs=out_specs,
    )

    vmem_limit = int(min(64 << 20, max(16 << 20, 2 * _block_bytes(B, in_f, tile_out, cdt.itemsize))))

    cost = pl.CostEstimate(
        flops=2 * C * B * out_f * in_f,
        transcendentals=(C * B * out_f) if activation else 0,
        bytes_accessed=(cdt.itemsize * C * (in_f * out_f + B * in_f)
                        + out_dtype.itemsize * C * B * out_f
                        + (4 * C * out_f if has_bias else 0)),
    )

    out_cm = pl.pallas_call(
        kernel,
        grid_spec=grid_spec,
        out_shape=jax.ShapeDtypeStruct((C, B, out_f), out_dtype),
        compiler_params=pltpu.CompilerParams(
            # no carried state across either grid axis -> both parallel (v7x: 2 TCs)
            dimension_semantics=("parallel", "parallel"),
            vmem_limit_bytes=vmem_limit),
        cost_estimate=cost,
    )(*args)

    if inv_perm is not None:
        out_cm = jnp.take(out_cm, inv_perm, axis=0)
    return jnp.transpose(out_cm, (1, 0, 2)), channels     # back to (B, C, out_f)


# ----------------------------------------------------------------------------- params / ref

def init_dense_params(key, num_channels, in_features, out_features, bias=True):
    """kaiming_uniform(a=sqrt(5)) style init, matching the PyTorch bounds (1/sqrt(fan_in))."""
    kw, kb = jax.random.split(key)
    bound = 1.0 / math.sqrt(in_features)
    weight = jax.random.uniform(kw, (num_channels, out_features, in_features),
                                jnp.float32, -bound, bound)
    b = None
    if bias:
        b = jax.random.uniform(kb, (num_channels, out_features),
                               jnp.float32, -bound, bound)
    return weight, b


def _reference(x, channels, weight, bias, activation, residual):
    w = weight[channels]                                  # (C, out, in)
    y = jnp.einsum("bci,coi->bco", x, w)
    if bias is not None:
        y = y + bias[channels][None, :, :]
    if activation:
        y = jnp.tanh(y)
    if residual:
        if y.shape[2] == x.shape[2]:
            y = y + x
        elif y.shape[2] == 2 * x.shape[2]:
            y = y + jnp.concatenate([x, x], axis=2)
    return y


# ----------------------------------------------------------------------------- demo

if __name__ == "__main__":
    root_key = jax.random.PRNGKey(0)

    def run_case(case_id, *, B, C, NC, in_f, out_f, bias, activation, residual,
                 compute_dtype=None, atol=1e-5):
        k = jax.random.fold_in(root_key, case_id)
        kx, kc, kp = jax.random.split(k, 3)
        x = jax.random.normal(kx, (B, C, in_f), jnp.float32)
        channels = jax.random.randint(kc, (C,), 0, NC, jnp.int32)
        w, b = init_dense_params(kp, NC, in_f, out_f, bias=bias)

        out, ch_out = dense_forward(x, channels, w, b,
                                    activation=activation, residual=residual,
                                    compute_dtype=compute_dtype)
        out = jax.block_until_ready(out)

        ref = _reference(x, channels, w, b, activation, residual)
        assert out.shape == ref.shape, f"case {case_id}: shape mismatch"
        assert jnp.allclose(out, ref, atol=atol, rtol=atol), f"case {case_id}: value mismatch"
        assert jnp.array_equal(ch_out, channels), f"case {case_id}: channels changed"

    # 1) bias + tanh + residual (out == in), f32, duplicate channel IDs likely
    run_case(0, B=8, C=6, NC=4, in_f=32, out_f=32,
             bias=True, activation=True, residual=True)
    # 2) residual 2x path (out == 2*in) — two lane-half adds, no concat
    run_case(1, B=8, C=5, NC=3, in_f=32, out_f=64,
             bias=True, activation=False, residual=True)
    # 3) no-bias path + bf16 MXU compute (f32 accumulate), loose tolerance
    run_case(2, B=8, C=4, NC=6, in_f=32, out_f=32,
             bias=False, activation=False, residual=False,
             compute_dtype=jnp.bfloat16, atol=3e-2)

    print("KERNEL_OK")
</pallas_src>

<mosaic_0001>
module attributes {stable_mosaic.version = 11 : i64} {
  func.func @_dense_kernel(%arg0: i32, %arg1: i32, %arg2: memref<6xi32, #tpu.memory_space<smem>>, %arg3: memref<1x8x32xf32, #tpu.memory_space<vmem>>, %arg4: memref<1x32x32xf32, #tpu.memory_space<vmem>>, %arg5: memref<1x1x32xf32, #tpu.memory_space<vmem>>, %arg6: memref<1x8x32xf32, #tpu.memory_space<vmem>>) attributes {dimension_semantics = [#tpu.dimension_semantics<parallel>, #tpu.dimension_semantics<parallel>], iteration_bounds = array<i64: 1, 6>, scalar_prefetch = 1 : i64, scratch_operands = 0 : i64, tpu.core_type = #tpu.core_type<tc>, window_params = [{transform_indices = @transform_0, window_bounds = array<i64: 1, 8, 32>}, {transform_indices = @transform_1, window_bounds = array<i64: 1, 32, 32>}, {transform_indices = @transform_2, window_bounds = array<i64: 1, 1, 32>}, {transform_indices = @transform_3, window_bounds = array<i64: 1, 8, 32>}]} {
    %c0 = arith.constant 0 : index
    %c0_0 = arith.constant 0 : index
    %c0_1 = arith.constant 0 : index
    %0 = vector.load %arg3[%c0, %c0_0, %c0_1] : memref<1x8x32xf32, #tpu.memory_space<vmem>>, vector<1x8x32xf32>
    %1 = vector.shape_cast %0 : vector<1x8x32xf32> to vector<8x32xf32>
    %c0_2 = arith.constant 0 : index
    %c0_3 = arith.constant 0 : index
    %c0_4 = arith.constant 0 : index
    %2 = vector.load %arg4[%c0_2, %c0_3, %c0_4] : memref<1x32x32xf32, #tpu.memory_space<vmem>>, vector<1x32x32xf32>
    %3 = vector.shape_cast %2 : vector<1x32x32xf32> to vector<32x32xf32>
    %cst = arith.constant dense<0.000000e+00> : vector<8x32xf32>
    %4 = tpu.matmul %1, %3, %cst {dimension_numbers = #tpu.dot_dimension_numbers<[1], [0], [0], [1], [0, 0, 1, 1], [], []>} : vector<8x32xf32>, vector<32x32xf32>, vector<8x32xf32> -> vector<8x32xf32>
    %c0_5 = arith.constant 0 : index
    %c0_6 = arith.constant 0 : index
    %c0_7 = arith.constant 0 : index
    %5 = vector.load %arg5[%c0_5, %c0_6, %c0_7] : memref<1x1x32xf32, #tpu.memory_space<vmem>>, vector<1x1x32xf32>
    %6 = vector.shape_cast %5 : vector<1x1x32xf32> to vector<1x32xf32>
    %7 = vector.broadcast %6 : vector<1x32xf32> to vector<8x32xf32>
    %8 = arith.addf %4, %7 : vector<8x32xf32>
    %9 = math.tanh %8 : vector<8x32xf32>
    %10 = arith.addf %9, %1 : vector<8x32xf32>
    %c0_8 = arith.constant 0 : index
    %c0_9 = arith.constant 0 : index
    %c0_10 = arith.constant 0 : index
    %11 = vector.load %arg6[%c0_8, %c0_9, %c0_10] : memref<1x8x32xf32, #tpu.memory_space<vmem>>, vector<1x8x32xf32>
    %12 = vector.shape_cast %11 : vector<1x8x32xf32> to vector<8x32xf32>
    %13 = vector.shape_cast %10 : vector<8x32xf32> to vector<1x8x32xf32>
    tpu.vector_store %arg6[%c0_8, %c0_9, %c0_10], %13 {strides = array<i32>} : memref<1x8x32xf32, #tpu.memory_space<vmem>>, vector<1x8x32xf32>,
    return
  }
  func.func @transform_0(%arg0: i32, %arg1: i32, %arg2: memref<6xi32, #tpu.memory_space<smem>>) -> (i32, i32, i32) {
    %c0_i32 = arith.constant 0 : i32
    %c0_i32_0 = arith.constant 0 : i32
    %c0_i32_1 = arith.constant 0 : i32
    return %arg1, %c0_i32, %c0_i32_0 : i32, i32, i32
  }
  func.func @transform_1(%arg0: i32, %arg1: i32, %arg2: memref<6xi32, #tpu.memory_space<smem>>) -> (i32, i32, i32) {
    %0 = arith.index_cast %arg1 : i32 to index
    %1 = memref.load %arg2[%0] : memref<6xi32, #tpu.memory_space<smem>>
    %c0_i32 = arith.constant 0 : i32
    %c0_i32_0 = arith.constant 0 : i32
    return %1, %c0_i32, %arg0 : i32, i32, i32
  }
  func.func @transform_2(%arg0: i32, %arg1: i32, %arg2: memref<6xi32, #tpu.memory_space<smem>>) -> (i32, i32, i32) {
    %0 = arith.index_cast %arg1 : i32 to index
    %1 = memref.load %arg2[%0] : memref<6xi32, #tpu.memory_space<smem>>
    %c0_i32 = arith.constant 0 : i32
    %c0_i32_0 = arith.constant 0 : i32
    return %1, %c0_i32, %arg0 : i32, i32, i32
  }
  func.func @transform_3(%arg0: i32, %arg1: i32, %arg2: memref<6xi32, #tpu.memory_space<smem>>) -> (i32, i32, i32) {
    %c0_i32 = arith.constant 0 : i32
    %c0_i32_0 = arith.constant 0 : i32
    return %arg1, %c0_i32, %arg0 : i32, i32, i32
  }
}

</mosaic_0001>

<bundles_post_ra>
// kernel: tpu_custom_call.1
= control target key start
LH: loop header
LB: loop body
LE: loop exit
PB: predicated region body
PF: predicated region fallthrough
CT: control target
= control target key end

     0   :  { %s1191_s0 = inlined_call_operand.hbm [shape: s32[6], index: 0, kind: input, shape index: {}]   ;;  %s1192_s1 = inlined_call_operand.hbm [shape: f32[6,8,32], index: 1, kind: input, shape index: {}]   ;;  %s1193_s2 = inlined_call_operand.hbm [shape: f32[4,32,32], index: 2, kind: input, shape index: {}]   ;;  %s1194_s3 = inlined_call_operand.vmem [shape: f32[4,1,32], index: 3, kind: input, shape index: {}]   ;;  %s1195_s4 = inlined_call_operand.hbm [shape: f32[6,8,32], index: 4, kind: output, shape index: {}]  }
   0x1   :  { %1201 = sst [smem:[#allocation18_spill]] %s1192_s1  ;;  %s649_s17 = scalar_lea.hbm %s1191_s0, 16 }
   0x2   :  { %p650_p0 = scmp.ne.s32.totalorder %s1191_s0, %s649_s17  ;;  %p653_p1 = scmp.lt.u32.totalorder %s649_s17, %s1191_s0 }
   0x4   :  { %p655_p2 = pnand %p653_p1, %p650_p0 }
   0x6   :  { %658 = shalt.err (!%p655_p2)  }
   0x7   :  { %s833_s22 = smov [#allocation3]  }
   0x8   :  { %10 = dma.hbm_to_smem %s1191_s0, 16, %s833_s22, [#allocation2] }
   0x9   :  { %783 = dma.done.wait [#allocation2], 16 }
   0xa   :  { %784 = vsyncadd [#allocation2], 4294967280 }
   0xb   :  { %12 = sfence }
   0xc   :  { %13 = vsyncpa [#allocation5], 0 }
   0xd   :  { %15 = vsyncpa [#allocation5 + $0x1], 0 }
   0xe   :  { %16 = vsyncpa [#allocation8], 0 }
   0xf   :  { %18 = vsyncpa [#allocation8 + $0x1], 0 }
  0x10   :  { %19 = vsyncpa [#allocation6], 0 }
  0x11   :  { %21 = vsyncpa [#allocation6 + $0x1], 0  ;;  %s879_s25 = smov 0   ;;  %s881_s26 = smov 0  }
  0x12   :  { %s883_s27 = smov 0   ;;  %s885_s28 = smov 0  }
  0x13   :  { %s887_s29 = smov 0   ;;  %s889_s0 = smov 0  }
  0x14   :  { %s891_s30 = smov 0   ;;  %s893_s5 = smov 0  }
  0x15   :  { %s895_s6 = smov 0  }
  0x16 LB: > { %s504_s7 = sadd.s32 4294967295, %s831_s6   ;;  %s505_s8 = sadd.s32 4294967294, %s831_s6   ;;  %s831_s6 = sphi %s895_s6, %s27_s6   ;;  %s827_s5 = sphi %s893_s5, %s1233_s5   ;;  %s823_s30 = sphi %s891_s30, %s1232_s30   ;;  %s819_s0 = sphi %s889_s0, %s1231_s0   ;;  %s815_s29 = sphi %s887_s29, %s1230_s29   ;;  %s811_s28 = sphi %s885_s28, %s1229_s28   ;;  %s807_s27 = sphi %s883_s27, %s1228_s27   ;;  %s803_s26 = sphi %s881_s26, %s1227_s26   ;;  %s799_s25 = sphi %s879_s25, %s1226_s25  }
  0x17   : > { %s36_s9 = sadd.s32 1, %s827_s5  ;;  %s46_s10 = sadd.s32 1, %s819_s0 }
  0x18   : > { %p37_p3 = scmp.ge.s32.totalorder %s36_s9, 6  ;;  %p53_p4 = scmp.ne.s32.totalorder %s819_s0, %s815_s29 }
  0x19   : > { %p54_p5 = scmp.eq.s32.totalorder %s831_s6, 0  ;;  %p59_p6 = scmp.ne.s32.totalorder %s815_s29, %s811_s28 }
  0x1a   : > { %s1235_s9 = smov (%p37_p3, %s36_s9), 0  ;;  %p944_p8 = scmp.eq.s32.totalorder %s504_s7, 0 }
  0x1b   : > { %1202 = sst [smem:[#allocation16_spill]] %s1235_s9  ;;  %p940_p7 = por %p54_p5, %p53_p4 }
  0x1c   : > { %s43_s13 = ssub.s32 %s827_s5, %s1235_s9  ;;  %s69_s14 = sld [smem:[#allocation3 + %s827_s5]] }
  0x1d   : > { %p44_p9 = scmp.eq.s32.totalorder %s43_s13, 0  ;;  %p956_p10 = por %p944_p8, %p59_p6 }
  0x1e   : > { %s70_s16 = sld [smem:[#allocation3 + %s1235_s9]]  ;;  %s76_s17 = sadd.s32 1, %s807_s27 }
  0x1f   : > { %s1205_s15 = scalar_select %p956_p10, 1, 0 }
  0x20   : > { %s963_s18 = scalar_select %p44_p9, %s819_s0, %s46_s10  }
  0x21   : > { %p83_p11 = scmp.ne.s32.totalorder %s807_s27, %s803_s26  ;;  %p89_p12 = scmp.ne.s32.totalorder %s803_s26, %s799_s25 }
  0x22   : > { %1206 = sst [smem:[#allocation17_spill]] %s963_s18  ;;  %p145_p13 = scmp.eq.s32.totalorder %s504_s7, 5 }
  0x23   : > { %p151_p0 = scmp.eq.s32.totalorder %s505_s8, 5  ;;  %p971_p1 = por %p83_p11, %p54_p5 }
  0x24   : > { %p977_p2 = por %p89_p12, %p944_p8  ;;  %p984_p3 = por %p145_p13, %p53_p4 }
  0x25   : > { %p991_p9 = por %p151_p0, %p59_p6  ;;  %s71_s23 = ssub.s32 %s69_s14, %s70_s16 }
  0x26   : > { %s1208_s20 = scalar_select %p977_p2, 1, 0 }
  0x27   : > { %s1209_s21 = scalar_select %p984_p3, 1, 0 }
  0x28   : > { %s1210_s22 = scalar_select %p991_p9, 1, 0 }
  0x29   : > { %p74_p5 = scmp.eq.s32.totalorder %s71_s23, 0  ;;  %p1197_p11 = scmp.lt.s32.totalorder %s831_s6, 6 }
  0x2a   : > { %s171_s24 = sand.u32 1, %s819_s0   ;;  %s509_s25 = sshll.u32 %s827_s5, 7 }
  0x2b   : > { %s999_s7 = scalar_select %p74_p5, %s807_s27, %s76_s17  }
  0x2c   : > { %s508_s8 = sshll.u32 %s171_s24, 3  ;;  %s1211_s1 = sld [smem:[#allocation18_spill]] }
  0x2d   : > { %s175_s9 = scalar_lea.vmem [#allocation4], %s508_s8  ;;  %p1010_p4 = pnand %p1197_p11, %p940_p7 }
  0x2e   : > { %s182_s18 = sshll.u32 %s175_s9, 4  ;;  %s172_s16 = scalar_lea.sflag [#allocation5], %s171_s24  ;;  %s1014_s18 = int_to_ptr.vmem [resolvable:$true] %s182_s18 }
  0x2f   : > { %p661_p13 = pneg %p1010_p4 }
  0x32   : > { %s1004_s13 = scalar_lea.hbm %s1211_s1, %s509_s25  ;;  %s664_s23 = scalar_lea.hbm %s1211_s1, 768 }
  0x33   : > { %s659_s17 = scalar_lea.hbm %s1004_s13, 128  ;;  %p665_p7 = scmp.lt.u32.totalorder %s1004_s13, %s1211_s1 }
  0x34   : > { %p660_p12 = scmp.ne.s32.totalorder %s1004_s13, %s659_s17  ;;  %p666_p11 = scmp.lt.u32.totalorder %s664_s23, %s659_s17 }
  0x35   : > { %p668_p8 = scmp.lt.u32.totalorder %s659_s17, %s1004_s13 }
  0x36   : > { %p662_p0 = pnand %p661_p13, %p660_p12  ;;  %p667_p6 = por %p666_p11, %p665_p7 }
  0x38   : > { %p663_p5 = pneg %p662_p0  ;;  %p669_p9 = por %p668_p8, %p667_p6 }
  0x3a   : > { %p670_p3 = pnand %p669_p9, %p663_p5 }
  0x3c   : > { %673 = shalt.err (!%p670_p3)
}
  0x3d   : > { %s674_s24 = scalar_lea.vmem %s1014_s18, 128  ;;  %s834_s10 = smov [#allocation4]  }
  0x3e   : > { %p675_p12 = scmp.ne.s32.totalorder %s1014_s18, %s674_s24  ;;  %s679_s12 = sshll.u32 %s834_s10, 4  ;;  %s680_s12 = int_to_ptr.vmem [resolvable:$false] %s679_s12 }
  0x3f   : > { %s681_s9 = scalar_lea.vmem %s680_s12, 256  ;;  %p682_p10 = scmp.lt.s32.totalorder %s1014_s18, %s680_s12 }
  0x40   : > { %p677_p0 = pnand %p675_p12, %p661_p13  ;;  %p683_p11 = scmp.lt.s32.totalorder %s681_s9, %s674_s24 }
  0x42   : > { %p678_p2 = pneg %p677_p0  ;;  %p684_p7 = por %p683_p11, %p682_p10 }
  0x44   : > { %p685_p6 = pnand %p684_p7, %p678_p2 }
  0x46   : > { %688 = shalt.err (!%p685_p6)
}
  0x47   : > { %557 = dma.hbm_to_vmem [thread:$0]  (!%p1010_p4), %s1004_s13, 128, %s1014_s18, %s172_s16  }
  0x48   : > { %p1213_p3 = scmp.lt.s32.totalorder %s831_s6, 7  ;;  %p1214_p9 = scmp.ge.s32.totalorder %s831_s6, 1 }
  0x49   : > { %s189_s14 = sand.u32 1, %s807_s27   ;;  %p1216_p2 = scmp.lt.s32.totalorder %s831_s6, 6 }
  0x4a   : > { %p1047_p10 = pnand %p1214_p9, %p1213_p3  ;;  %s510_s11 = sshll.u32 %s189_s14, 5 }
  0x4b   : > { %p1056_p8 = pnand %p1216_p2, %p971_p1  ;;  %p1218_p4 = pmov %p1216_p2 }
  0x4c   : > { %s547_s25 = scalar_select %p971_p1, [#allocation3], [#allocation10] }
  0x4d   : > { %s548_s18 = scalar_select %p971_p1, %s827_s5, 0 }
  0x4e   : > { %s1237_s25 = smov (!%p1218_p4, %s547_s25), [#allocation11]  ;;  %p1219_p13 = pmov %p1216_p2 }
  0x4f   : > { %s193_s16 = scalar_lea.vmem [#allocation7], %s510_s11  ;;  %s1076_s19 = scalar_lea.sflag [#allocation8], %s189_s14 }
  0x50   : > { %s1239_s18 = smov (!%p1219_p13, %s548_s18), 0  ;;  %s202_s8 = sshll.u32 %s193_s16, 4  ;;  %s1069_s8 = int_to_ptr.vmem [resolvable:$true] %s202_s8 }
  0x51   : > { %s194_s13 = sld [smem:[%s1237_s25 + %s1239_s18]]  ;;  %p691_p5 = pneg %p1056_p8 }
  0x52   : > { %s694_s18 = scalar_lea.hbm %s1193_s2, 2048 }
  0x57   : > { %s523_s24 = sshll.u32 %s194_s13, 9 }
  0x58   : > { %s1074_s9 = scalar_lea.hbm %s1193_s2, %s523_s24 }
  0x59   : > { %s689_s1 = scalar_lea.hbm %s1074_s9, 512  ;;  %p695_p11 = scmp.lt.u32.totalorder %s1074_s9, %s1193_s2 }
  0x5a   : > { %p690_p1 = scmp.ne.s32.totalorder %s1074_s9, %s689_s1  ;;  %p696_p7 = scmp.lt.u32.totalorder %s694_s18, %s689_s1 }
  0x5b   : > { %p698_p3 = scmp.lt.u32.totalorder %s689_s1, %s1074_s9 }
  0x5c   : > { %p692_p12 = pnand %p691_p5, %p690_p1  ;;  %p697_p6 = por %p696_p7, %p695_p11 }
  0x5e   : > { %p693_p0 = pneg %p692_p12  ;;  %p699_p9 = por %p698_p3, %p697_p6 }
  0x60   : > { %p700_p2 = pnand %p699_p9, %p693_p0 }
  0x62   : > { %703 = shalt.err (!%p700_p2)
}
  0x63   : > { %s704_s14 = scalar_lea.vmem %s1069_s8, 512  ;;  %s835_s24 = smov [#allocation7]  }
  0x64   : > { %p705_p4 = scmp.ne.s32.totalorder %s1069_s8, %s704_s14  ;;  %s709_s10 = sshll.u32 %s835_s24, 4  ;;  %s710_s10 = int_to_ptr.vmem [resolvable:$false] %s709_s10 }
  0x65   : > { %s711_s12 = scalar_lea.vmem %s710_s10, 1024  ;;  %p712_p12 = scmp.lt.s32.totalorder %s1069_s8, %s710_s10 }
  0x66   : > { %p707_p13 = pnand %p705_p4, %p691_p5  ;;  %p713_p11 = scmp.lt.s32.totalorder %s711_s12, %s704_s14 }
  0x68   : > { %p708_p1 = pneg %p707_p13  ;;  %p714_p7 = por %p713_p11, %p712_p12 }
  0x6a   : > { %p715_p6 = pnand %p714_p7, %p708_p1 }
  0x6c   : > { %718 = shalt.err (!%p715_p6)
}
  0x6d   : > { %s836_s1 = smov 128   ;;  %s837_s11 = smov 8  }
  0x6e   : > { %562 = dma.hbm_to_vmem [thread:$0]  (!%p1056_p8), %s1074_s9, 512, %s1069_s8, %s1076_s19, %s836_s1, %s836_s1, %s837_s11  }
  0x6f   : > { %225 = sbr.rel (%p1047_p10) target bundleno = 374 (0x176), region = 32  ;;  %s1107_s25 = sand.u32 (!%p1047_p10), 1, %s815_s29  }
  0x70   : > { %s514_s18 = sshll.u32 (!%p1047_p10), %s1107_s25, 3  ;;  %s228_s13 = scalar_lea.sflag (!%p1047_p10), [#allocation5], %s1107_s25 }
  0x71   : > { %s231_s16 = scalar_lea.vmem (!%p1047_p10), [#allocation4], %s514_s18  ;;  %p1220_p5 = scmp.ne.s32.totalorder (!%p1047_p10), %s1205_s15, 0 }
  0x76   : > { %786 = dma.done.wait (%p1220_p5), %s228_s13, 128  }
  0x77   : > { %788 = vsyncadd (%p1220_p5), %s228_s13, 4294967168  ;;  %s236_s17 = sand.u32 1, %s803_s26   ;;  %p1221_p10 = scmp.ne.s32.totalorder %s1208_s20, 0 }
  0x78   : > { %s515_s23 = sshll.u32 %s236_s17, 5  ;;  %s237_s8 = scalar_lea.sflag [#allocation8], %s236_s17 }
  0x79   : > { %s240_s9 = scalar_lea.vmem [#allocation7], %s515_s23 }
  0x7a   : > { %790 = dma.done.wait (%p1221_p10), %s237_s8, 512  }
  0x7b   : > { %792 = vsyncadd (%p1221_p10), %s237_s8, 4294966784  ;;  %v838_v0 = vmov 0.0|0.0   ;;  %vm839_vm0 = vmmov 0   ;;  %v840_v1 = vmov 0.0   ;;  %v285_v2 = vld [vmem:[%s240_s9] sm:$0xff]  ;;  %v286_v3 = vld [vmem:[%s240_s9 + $0x8] sm:$0xff] }
  0x7c   : > { %540 = vmatprep.subr.bf16.mxu0 %v838_v0  ;;  %537 = vmatprep.mubr.msk.f32.mxu0 %vm839_vm0, %v840_v1  ;;  %v287_v4 = vld [vmem:[%s240_s9 + $0x10] sm:$0xff]  ;;  %v541_v5 = vpack.c.bf16 %v286_v3, %v285_v2  ;;  %v288_v6 = vld [vmem:[%s240_s9 + $0x18] sm:$0xff]  ;;  %vm296_vm1 = vcmask 261120   ;;  %s276_s15 = sld [smem:[#allocation3 + %s823_s30]]  ;;  %s520_s24 = sshll.u32 %s823_s30, 7 }
  0x7d   : > { %v544_v7 = vpack.c.bf16 %v288_v6, %v287_v4  ;;  %v284_v8 = vld [vmem:[%s231_s16] sm:$0xff]  ;;  %s274_s10 = scalar_lea.vmem [#allocation9], %s514_s18  ;;  %s1133_s13 = scalar_lea.hbm %s1195_s4, %s520_s24 }
  0x7e   : > { %542 = vmatpush3.bf16.msra.mxu0 %v541_v5  ;;  %s388_s12 = sshll.u32 %s274_s10, 4  ;;  %s374_s16 = scalar_lea.sflag [#allocation6], %s1107_s25  ;;  %s1135_s12 = int_to_ptr.vmem [resolvable:$true] %s388_s12 }
  0x7f   : > { %543 = vmatprep.subr.bf16.mxu0 %v838_v0  ;;  %s719_s17 = scalar_lea.vmem %s1135_s12, 128  ;;  %p1222_p3 = scmp.ne.s32.totalorder %s1209_s21, 0 }
  0x80   : > { %p720_p0 = scmp.ne.s32.totalorder %s1135_s12, %s719_s17  ;;  %s841_s30 = smov [#allocation9]  }
  0x81   : > { %s723_s18 = sshll.u32 %s841_s30, 4  ;;  %s724_s18 = int_to_ptr.vmem [resolvable:$false] %s723_s18 }
  0x82   : > { %545 = vmatpush3.bf16.msra.mxu0 %v544_v7  ;;  %p277_p8 = scmp.lt.s32.totalorder %s276_s15, 3  ;;  %p721_p9 = pnand %p720_p0, %p1222_p3 }
  0x83   : > { %s725_s23 = scalar_lea.vmem %s724_s18, 256  ;;  %p726_p4 = scmp.lt.s32.totalorder %s1135_s12, %s724_s18 }
  0x84   : > { %s1241_s15 = smov (!%p277_p8, %s276_s15), 3  ;;  %p722_p2 = pneg %p721_p9 }
  0x85   : > { %538 = vmatmul.mubr.msk.f32.vlgmr.msra.gmra.mrb[0].mxu0 %vm296_vm1, %v284_v8  ;;  %s282_s14 = scalar_lea.vmem %s1194_s3, %s1241_s15  ;;  %p727_p13 = scmp.lt.s32.totalorder %s725_s23, %s719_s17 }
  0x86   : > { %v517_v9 = vld [vmem:[%s282_s14] ss:$0 sm:$0xff] }
  0x87   : > { %p728_p1 = por %p727_p13, %p726_p4 }
  0x89   : > { %p729_p12 = pnand %p728_p1, %p722_p2 }
 0x158   : > { %v366_v10 = vpop.f32.mrb[0].mxu0 }
 0x159   : > { %v367_v11 = vadd.f32 %v517_v9, %v366_v10  ;;  %v539_v12 = vpop.f32.mrb[1].mxu0 }
 0x15b   : > { %647 = vtanh.f32 %v367_v11 }
 0x165   : > { %v648_v13 = vpop.eup %647 }
 0x166   : > { %v371_v14 = vadd.f32 %v648_v13, %v284_v8 }
 0x168   : > { %372 = vst.msk [vmem:[%s274_s10] sm:$0xff] %vm296_vm1, %v371_v14 }
 0x169   : > { %732 = shalt.err (!%p729_p12)
}
 0x16a   : > { %s733_s25 = scalar_lea.hbm %s1133_s13, 128  ;;  %s737_s15 = scalar_lea.hbm %s1195_s4, 768 }
 0x16b   : > { %p734_p11 = scmp.ne.s32.totalorder %s1133_s13, %s733_s25  ;;  %p738_p5 = scmp.lt.u32.totalorder %s1133_s13, %s1195_s4 }
 0x16c   : > { %p739_p10 = scmp.lt.u32.totalorder %s737_s15, %s733_s25  ;;  %p741_p0 = scmp.lt.u32.totalorder %s733_s25, %s1133_s13 }
 0x16d   : > { %p735_p7 = pnand %p734_p11, %p1222_p3 }
 0x16e   : > { %p740_p8 = por %p739_p10, %p738_p5 }
 0x16f   : > { %p736_p6 = pneg %p735_p7 }
 0x170   : > { %p742_p9 = por %p741_p0, %p740_p8 }
 0x172   : > { %p743_p2 = pnand %p742_p9, %p736_p6 }
 0x174   : > { %746 = shalt.err (!%p743_p2)
}
 0x175   : > { %552 = dma.vmem_to_hbm [thread:$0]  (%p1222_p3), %s1135_s12, 128, %s1133_s13, %s374_s16  }
 0x176 PF: > { %p568_p4 = scmp.ge.s32.totalorder %s831_s6, 2  ;;  %s400_s14 = sand.u32 1, %s811_s28  }
 0x177   : > { %p1223_p13 = scmp.ne.s32.totalorder %s1210_s22, 0  ;;  %s401_s24 = scalar_lea.sflag [#allocation6], %s400_s14 }
 0x179   : > { %p564_p1 = pnand %p568_p4, %p1223_p13 }
 0x17b   : > { %794 = dma.done.wait (!%p564_p1), %s401_s24, 128  }
 0x17c   : > { %796 = vsyncadd (!%p564_p1), %s401_s24, 4294967168  ;;  %s27_s6 = sadd.s32 1, %s831_s6   ;;  %s1224_s21 = sld [smem:[#allocation17_spill]] }
 0x17d   : > { %p24_p12 = scmp.ge.s32.totalorder %s27_s6, 8   ;;  %s1225_s10 = sld [smem:[#allocation16_spill]] }
 0x17e   : > { %s1226_s25 = smov %s803_s26  ;;  %s1227_s26 = smov %s807_s27 }
 0x17f   : > { %s1228_s27 = smov %s999_s7  ;;  %s1229_s28 = smov %s815_s29 }
 0x180   : > { %s1230_s29 = smov %s819_s0  ;;  %s1232_s30 = smov %s827_s5 }
 0x181   :  { %26 = sbr.rel (!%p24_p12) target bundleno = 22 (0x16), region = 93 }
 0x182   : > { %s1231_s0 = smov %s1224_s21 }
 0x183   : > { %s1233_s5 = smov %s1225_s10 }
 0x188   :  { %406 = vsyncpa [#allocation5], 1 }
 0x189   :  { %408 = vsyncpa [#allocation5 + $0x1], 1 }
 0x18a   :  { %409 = vsyncpa [#allocation8], 1 }
 0x18b   :  { %411 = vsyncpa [#allocation8 + $0x1], 1 }
 0x18c   :  { %412 = vsyncpa [#allocation6], 1 }
 0x18d   :  { %414 = vsyncpa [#allocation6 + $0x1], 1 }

</bundles_post_ra>
